<compile_context>
chip_gen: v6e
topology: v6e:2x2x1
jax: 0.10.0
libtpu: 0.0.40
codegen_flags: <defaults>
</compile_context>

<pallas_src>
import functools

import jax
import jax.numpy as jnp
import numpy as np
from jax.experimental import pallas as pl
from jax.experimental.pallas import tpu as pltpu

_LN_EPS = 1e-5
_SQRT2 = 1.4142135623730951


def _round_up(a, b):
    return (a + b - 1) // b * b


# ---------------------------------------------------------------------------
# In-kernel helpers
# ---------------------------------------------------------------------------
def _erf(x):
    # Abramowitz & Stegun 7.1.26 (abs err ~1.5e-7).  Uses only VPU/EUP ops so it lowers in Mosaic.
    a1, a2, a3, a4, a5 = 0.254829592, -0.284496736, 1.421413741, -1.453152027, 1.061405429
    p = 0.3275911
    s = jnp.where(x >= 0.0, 1.0, -1.0)
    ax = jnp.abs(x)
    t = 1.0 / (1.0 + p * ax)
    poly = ((((a5 * t + a4) * t + a3) * t + a2) * t + a1) * t
    return s * (1.0 - poly * jnp.exp(-ax * ax))


def _gelu_exact(x):
    # nn.GELU() default is the exact (erf) form.
    return 0.5 * x * (1.0 + _erf(x / _SQRT2))


# ---------------------------------------------------------------------------
# Kernel 1: fused 1x1-conv (token matmul, no bias) + LayerNorm(dim_out)
#   row-tiled: grid=(M//tm,), (K,N) weight stays resident, rows pipelined.
# ---------------------------------------------------------------------------
def _proj_ln_kernel(x_ref, w_ref, g_ref, b_ref, o_ref):
    h = jnp.dot(x_ref[...], w_ref[...], preferred_element_type=jnp.float32)   # (tm, N)
    mu = jnp.mean(h, axis=-1, keepdims=True)
    var = jnp.mean(jnp.square(h - mu), axis=-1, keepdims=True)
    o_ref[...] = ((h - mu) * jax.lax.rsqrt(var + _LN_EPS) * g_ref[...] + b_ref[...]).astype(o_ref.dtype)


def proj_ln_pallas(x, w, gamma, beta, *, tm_max=512):
    M, K = x.shape
    N = w.shape[1]
    tm = min(tm_max, _round_up(M, 8))
    Mp = _round_up(M, tm)
    if Mp != M:
        x = jnp.pad(x, ((0, Mp - M), (0, 0)))
    cost = pl.CostEstimate(flops=int(2 * Mp * K * N + 8 * Mp * N),
                           transcendentals=int(Mp),
                           bytes_accessed=int(4 * (Mp * K + K * N + Mp * N)))
    out = pl.pallas_call(
        _proj_ln_kernel,
        out_shape=jax.ShapeDtypeStruct((Mp, N), x.dtype),
        grid=(Mp // tm,),
        in_specs=[pl.BlockSpec((tm, K), lambda i: (i, 0)),
                  pl.BlockSpec((K, N), lambda i: (0, 0)),
                  pl.BlockSpec((1, N), lambda i: (0, 0)),
                  pl.BlockSpec((1, N), lambda i: (0, 0))],
        out_specs=pl.BlockSpec((tm, N), lambda i: (i, 0)),
        compiler_params=pltpu.CompilerParams(dimension_semantics=("parallel",)),
        cost_estimate=cost,
    )(x, w, gamma.reshape(1, N), beta.reshape(1, N))
    return out[:M]


# ---------------------------------------------------------------------------
# Kernel 2: fused depthwise 5x5 conv (pad 2, with bias) + LayerNormProxy + GELU
#   channels-last (B, H, W, C); grid over batch; 25 shifted multiply-adds.
# ---------------------------------------------------------------------------
def _dwconv_ln_gelu_kernel(xp_ref, kw_ref, kb_ref, g_ref, b_ref, o_ref, *, H, W):
    C = o_ref.shape[-1]
    acc = jnp.zeros((H, W, C), jnp.float32)
    for ky in range(5):
        for kx in range(5):
            tap = xp_ref[0, ky:ky + H, kx:kx + W, :].astype(jnp.float32)
            acc = acc + tap * kw_ref[ky:ky + 1, kx:kx + 1, :]                 # (1,1,C) broadcast
    acc = acc + kb_ref[...]                                                   # (1,C) broadcast
    mu = jnp.mean(acc, axis=-1, keepdims=True)
    var = jnp.mean(jnp.square(acc - mu), axis=-1, keepdims=True)
    yn = (acc - mu) * jax.lax.rsqrt(var + _LN_EPS) * g_ref[...] + b_ref[...]
    o_ref[0] = _gelu_exact(yn).astype(o_ref.dtype)


def dwconv_ln_gelu_pallas(x_img, kw, kb, gamma, beta):
    B, H, W, C = x_img.shape
    xp = jnp.pad(x_img, ((0, 0), (2, 2), (2, 2), (0, 0)))
    kernel = functools.partial(_dwconv_ln_gelu_kernel, H=H, W=W)
    cost = pl.CostEstimate(flops=int(2 * 25 * B * H * W * C + 12 * B * H * W * C),
                           transcendentals=int(2 * B * H * W * C),
                           bytes_accessed=int(4 * (B * (H + 4) * (W + 4) * C + B * H * W * C + 25 * C)))
    return pl.pallas_call(
        kernel,
        out_shape=jax.ShapeDtypeStruct((B, H, W, C), x_img.dtype),
        grid=(B,),
        in_specs=[pl.BlockSpec((1, H + 4, W + 4, C), lambda b: (b, 0, 0, 0)),
                  pl.BlockSpec((5, 5, C), lambda b: (0, 0, 0)),
                  pl.BlockSpec((1, C), lambda b: (0, 0)),
                  pl.BlockSpec((1, C), lambda b: (0, 0)),
                  pl.BlockSpec((1, C), lambda b: (0, 0))],
        out_specs=pl.BlockSpec((1, H, W, C), lambda b: (b, 0, 0, 0)),
        compiler_params=pltpu.CompilerParams(dimension_semantics=("parallel",)),
        cost_estimate=cost,
    )(xp, kw, kb.reshape(1, C), gamma.reshape(1, C), beta.reshape(1, C))


# ---------------------------------------------------------------------------
# Kernel 3: offset head = 2x2 stride-2 conv (128 -> 2, no bias) as im2col matmul,
#           fused with tanh * (2/H, 2/W).  Row-tiled like kernel 1.
# ---------------------------------------------------------------------------
def _offset_head_kernel(p_ref, w_ref, s_ref, o_ref):
    h = jnp.dot(p_ref[...], w_ref[...], preferred_element_type=jnp.float32)   # (tm, 2)
    o_ref[...] = (jnp.tanh(h) * s_ref[...]).astype(o_ref.dtype)


def offset_head_pallas(patches, wmat, scale_row):
    R, K = patches.shape
    O = wmat.shape[1]
    tm = min(256, _round_up(R, 8))
    Rp = _round_up(R, tm)
    if Rp != R:
        patches = jnp.pad(patches, ((0, Rp - R), (0, 0)))
    out = pl.pallas_call(
        _offset_head_kernel,
        out_shape=jax.ShapeDtypeStruct((Rp, O), patches.dtype),
        grid=(Rp // tm,),
        in_specs=[pl.BlockSpec((tm, K), lambda i: (i, 0)),
                  pl.BlockSpec((K, O), lambda i: (0, 0)),
                  pl.BlockSpec((1, O), lambda i: (0, 0))],
        out_specs=pl.BlockSpec((tm, O), lambda i: (i, 0)),
        compiler_params=pltpu.CompilerParams(dimension_semantics=("parallel",)),
    )(patches, wmat, scale_row)
    return out[:R]


# ---------------------------------------------------------------------------
# Kernel 4: bilinear grid_sample (align_corners=True, padding_mode='zeros').
#   Per batch: build the (P, H*W) interpolation matrix with broadcasted_iota
#   compares (4 corner taps, OOB taps masked to zero) and matmul against the
#   channels-last image tokens on the MXU -> lane-dense (P, C) output.
# TODO(synk): for large H*W switch this to a DMA-gather formulation; the dense
#             interpolation-matrix matmul is intended for the small maps this module sees.
# ---------------------------------------------------------------------------
def _grid_sample_kernel(pos_ref, x_ref, o_ref, *, H, W):
    P = pos_ref.shape[1]
    HW = H * W
    pos = pos_ref[0].astype(jnp.float32)                       # (P, 2), (y, x) normalized
    iy = (pos[:, 0:1] + 1.0) * (0.5 * (H - 1))
    ix = (pos[:, 1:2] + 1.0) * (0.5 * (W - 1))
    y0f = jnp.floor(iy)
    x0f = jnp.floor(ix)
    wy1 = iy - y0f
    wx1 = ix - x0f
    y0 = y0f.astype(jnp.int32)
    x0 = x0f.astype(jnp.int32)

    q = jax.lax.broadcasted_iota(jnp.int32, (P, HW), 1)
    m = jnp.zeros((P, HW), jnp.float32)
    for cy, wy in ((0, 1.0 - wy1), (1, wy1)):
        for cx, wx in ((0, 1.0 - wx1), (1, wx1)):
            ty = y0 + cy
            tx = x0 + cx
            valid = (ty >= 0) & (ty < H) & (tx >= 0) & (tx < W)    # zeros padding
            m = m + jnp.where((q == ty * W + tx) & valid, wy * wx, 0.0)

    o_ref[0] = jnp.dot(m, x_ref[0].astype(jnp.float32),
                       preferred_element_type=jnp.float32).astype(o_ref.dtype)


def grid_sample_pallas(pos_yx, x_tok, H, W):
    B, P, _ = pos_yx.shape
    C = x_tok.shape[-1]
    kernel = functools.partial(_grid_sample_kernel, H=H, W=W)
    return pl.pallas_call(
        kernel,
        out_shape=jax.ShapeDtypeStruct((B, P, C), x_tok.dtype),
        grid=(B,),
        in_specs=[pl.BlockSpec((1, P, 2), lambda b: (b, 0, 0)),
                  pl.BlockSpec((1, H * W, C), lambda b: (b, 0, 0))],
        out_specs=pl.BlockSpec((1, P, C), lambda b: (b, 0, 0)),
        compiler_params=pltpu.CompilerParams(dimension_semantics=("parallel",)),
    )(pos_yx, x_tok)


# ---------------------------------------------------------------------------
# Module wrapper (reshapes / reference-grid / parameter plumbing = tiny glue)
# ---------------------------------------------------------------------------
def dcn_forward(token_dict, params, *, dim_out=128):
    td = dict(token_dict)
    x = td["x"]                                   # (B, N, 64)
    H, W = td["map_size"]
    B, N, Cin = x.shape
    C = dim_out

    # change_channel (1x1 conv, no bias) fused with LayerNorm(dim_out)
    x_ln = proj_ln_pallas(x.reshape(B * N, Cin), params["w_cc"],
                          params["ln1_g"], params["ln1_b"]).reshape(B, N, C)
    td["x"] = x_ln                                # mirrors token_dict['x'] = norm(conv(...)) (overwritten below)
    x_img = x_ln.reshape(B, H, W, C)              # channels-last image (token n <-> pixel (n//W, n%W))

    # conv_offset[0:3]: depthwise 5x5 conv + LayerNormProxy + GELU (fused)
    y = dwconv_ln_gelu_pallas(x_img, params["dw_w"], params["dw_b"],
                              params["ln2_g"], params["ln2_b"])

    # conv_offset[3]: 2x2 stride-2 conv -> 2 offset channels, then tanh * (2/H, 2/W)
    Ho = (H - 2) // 2 + 1
    Wo = (W - 2) // 2 + 1
    patches = y[:, :2 * Ho, :2 * Wo, :].reshape(B, Ho, 2, Wo, 2, C)
    patches = patches.transpose(0, 1, 3, 2, 4, 5).reshape(B * Ho * Wo, 4 * C)   # tiny im2col glue
    scale_row = jnp.array([[2.0 / H, 2.0 / W]], jnp.float32)
    off = offset_head_pallas(patches, params["off_w"].reshape(4 * C, 2), scale_row)
    off = off.reshape(B, Ho, Wo, 2)

    # reference points: torch.linspace(1, H-1, H-1) normalized to [-1, 1]  (stored as (y, x))
    ref_y = jnp.arange(1, H, dtype=jnp.float32) / H * 2.0 - 1.0
    ref_x = jnp.arange(1, W, dtype=jnp.float32) / W * 2.0 - 1.0
    ref = jnp.stack(jnp.meshgrid(ref_y, ref_x, indexing="ij"), axis=-1)[None]   # (1, H-1, W-1, 2)

    pos = off + ref                               # broadcast (same rule as the PyTorch module)
    Hg, Wg = pos.shape[1], pos.shape[2]

    sampled = grid_sample_pallas(pos.reshape(B, Hg * Wg, 2), x_ln, H, W)        # (B, Hg*Wg, C)

    H_new = (H + 1) // 2                          # == math.floor((H-1)/2 + 1)
    W_new = (W + 1) // 2
    td["x"] = sampled.reshape(B, Hg, Wg, C).transpose(0, 3, 1, 2)               # (B, C, Hg, Wg) output contract
    td["map_size"] = [H_new, W_new]
    return td, H_new, W_new


# ---------------------------------------------------------------------------
# Deterministic parameter init (shapes implied by the module: in-channels 64,
# change_channel dim = dim_out = 128; LayerNorm gamma=1/beta=0).
# ---------------------------------------------------------------------------
def init_params(key, *, c_in=64, dim_out=128):
    ks = jax.random.split(key, 4)
    std = 0.02
    return {
        "w_cc": std * jax.random.normal(ks[0], (c_in, dim_out), jnp.float32),    # 1x1 conv, bias=False
        "ln1_g": jnp.ones((dim_out,), jnp.float32),
        "ln1_b": jnp.zeros((dim_out,), jnp.float32),
        "dw_w": std * jax.random.normal(ks[1], (5, 5, dim_out), jnp.float32),    # depthwise 5x5 (per-channel)
        "dw_b": std * jax.random.normal(ks[2], (dim_out,), jnp.float32),
        "ln2_g": jnp.ones((dim_out,), jnp.float32),
        "ln2_b": jnp.zeros((dim_out,), jnp.float32),
        "off_w": std * jax.random.normal(ks[3], (2, 2, dim_out, 2), jnp.float32),  # HWIO, bias=False
    }


# ---------------------------------------------------------------------------
# Pure-JAX reference (independent check: lax convs + gather-based grid_sample)
# ---------------------------------------------------------------------------
def _ref_grid_sample(img, pos_yx, H, W):
    B = img.shape[0]
    iy = (pos_yx[..., 0] + 1.0) * 0.5 * (H - 1)
    ix = (pos_yx[..., 1] + 1.0) * 0.5 * (W - 1)
    y0 = jnp.floor(iy)
    x0 = jnp.floor(ix)
    wy1 = iy - y0
    wx1 = ix - x0
    b_idx = jnp.arange(B)[:, None, None]

    def tap(yy, xx, w):
        valid = (yy >= 0) & (yy <= H - 1) & (xx >= 0) & (xx <= W - 1)
        yi = jnp.clip(yy, 0, H - 1).astype(jnp.int32)
        xi = jnp.clip(xx, 0, W - 1).astype(jnp.int32)
        return img[b_idx, yi, xi] * (w * valid)[..., None]

    return (tap(y0, x0, (1 - wy1) * (1 - wx1)) + tap(y0, x0 + 1, (1 - wy1) * wx1)
            + tap(y0 + 1, x0, wy1 * (1 - wx1)) + tap(y0 + 1, x0 + 1, wy1 * wx1))


def reference_forward(token_dict, p, *, dim_out=128):
    x = token_dict["x"]
    H, W = token_dict["map_size"]
    B, N, _ = x.shape
    C = dim_out

    x = x @ p["w_cc"]
    mu = x.mean(-1, keepdims=True)
    var = ((x - mu) ** 2).mean(-1, keepdims=True)
    x = (x - mu) / jnp.sqrt(var + _LN_EPS) * p["ln1_g"] + p["ln1_b"]
    x_img = x.reshape(B, H, W, C)

    y = jax.lax.conv_general_dilated(
        x_img, p["dw_w"].reshape(5, 5, 1, C), (1, 1), ((2, 2), (2, 2)),
        dimension_numbers=("NHWC", "HWIO", "NHWC"), feature_group_count=C) + p["dw_b"]
    mu = y.mean(-1, keepdims=True)
    var = ((y - mu) ** 2).mean(-1, keepdims=True)
    y = (y - mu) / jnp.sqrt(var + _LN_EPS) * p["ln2_g"] + p["ln2_b"]
    y = jax.nn.gelu(y, approximate=False)

    off = jax.lax.conv_general_dilated(
        y, p["off_w"], (2, 2), "VALID", dimension_numbers=("NHWC", "HWIO", "NHWC"))
    off = jnp.tanh(off) * jnp.array([2.0 / H, 2.0 / W], jnp.float32)

    ref_y = jnp.arange(1, H, dtype=jnp.float32) / H * 2.0 - 1.0
    ref_x = jnp.arange(1, W, dtype=jnp.float32) / W * 2.0 - 1.0
    ref = jnp.stack(jnp.meshgrid(ref_y, ref_x, indexing="ij"), axis=-1)[None]
    pos = off + ref

    out = _ref_grid_sample(x_img, pos, H, W)      # (B, Hg, Wg, C)
    return out.transpose(0, 3, 1, 2), (H + 1) // 2, (W + 1) // 2


if __name__ == "__main__":
    # Shapes implied by the module: change_channel takes 64 input channels and emits dim=128, which
    # LayerNorm(dim_out) then normalizes => dim_out = 128.  The offset+reference broadcast in the original
    # forward is only shape-consistent for map_size values in {2, 3}; we use a 3x3 map (N = 9 tokens).
    B, H, W = 2, 3, 3
    C_IN, DIM_OUT = 64, 128
    N = H * W

    key = jax.random.PRNGKey(0)
    kx, kp = jax.random.split(key)
    x = jax.random.normal(kx, (B, N, C_IN), jnp.float32)
    params = init_params(kp, c_in=C_IN, dim_out=DIM_OUT)

    token_dict = {"x": x, "map_size": [H, W]}

    out_dict, H_new, W_new = dcn_forward(token_dict, params, dim_out=DIM_OUT)
    out = jax.block_until_ready(out_dict["x"])

    ref_out, H_ref, W_ref = reference_forward(token_dict, params, dim_out=DIM_OUT)
    assert (H_new, W_new) == (H_ref, W_ref) == (2, 2)
    assert out.shape == ref_out.shape == (B, DIM_OUT, 2, 2)
    np.testing.assert_allclose(np.asarray(out), np.asarray(ref_out), atol=1e-3, rtol=1e-3)

    print("KERNEL_OK")
</pallas_src>

<mosaic_0001>
module attributes {stable_mosaic.version = 11 : i64} {
  func.func @_proj_ln_kernel(%arg0: i32, %arg1: memref<24x64xf32, #tpu.memory_space<vmem>>, %arg2: memref<64x128xf32, #tpu.memory_space<vmem>>, %arg3: memref<1x128xf32, #tpu.memory_space<vmem>>, %arg4: memref<1x128xf32, #tpu.memory_space<vmem>>, %arg5: memref<24x128xf32, #tpu.memory_space<vmem>>) attributes {dimension_semantics = [#tpu.dimension_semantics<parallel>], iteration_bounds = array<i64: 1>, scalar_prefetch = 0 : i64, scratch_operands = 0 : i64, tpu.core_type = #tpu.core_type<tc>, window_params = [{transform_indices = @transform_0, window_bounds = array<i64: 24, 64>}, {pipeline_mode = #tpu.pipeline_mode<synchronous>, transform_indices = @transform_1, window_bounds = array<i64: 64, 128>}, {pipeline_mode = #tpu.pipeline_mode<synchronous>, transform_indices = @transform_2, window_bounds = array<i64: 1, 128>}, {pipeline_mode = #tpu.pipeline_mode<synchronous>, transform_indices = @transform_3, window_bounds = array<i64: 1, 128>}, {transform_indices = @transform_4, window_bounds = array<i64: 24, 128>}]} {
    %c0 = arith.constant 0 : index
    %c0_0 = arith.constant 0 : index
    %0 = vector.load %arg1[%c0, %c0_0] : memref<24x64xf32, #tpu.memory_space<vmem>>, vector<24x64xf32>
    %c0_1 = arith.constant 0 : index
    %c0_2 = arith.constant 0 : index
    %1 = vector.load %arg2[%c0_1, %c0_2] : memref<64x128xf32, #tpu.memory_space<vmem>>, vector<64x128xf32>
    %cst = arith.constant dense<0.000000e+00> : vector<24x128xf32>
    %2 = tpu.matmul %0, %1, %cst {dimension_numbers = #tpu.dot_dimension_numbers<[1], [0], [0], [1], [0, 0, 1, 1], [], []>} : vector<24x64xf32>, vector<64x128xf32>, vector<24x128xf32> -> vector<24x128xf32>
    %cst_3 = arith.constant dense<0.000000e+00> : vector<24xf32>
    %3 = vector.multi_reduction <add>, %2, %cst_3 [1] : vector<24x128xf32> to vector<24xf32>
    %4 = vector.shape_cast %3 : vector<24xf32> to vector<24x1xf32>
    %cst_4 = arith.constant 1.280000e+02 : f32
    %5 = vector.broadcast %cst_4 : f32 to vector<24x1xf32>
    %6 = arith.divf %4, %5 : vector<24x1xf32>
    %7 = vector.broadcast %6 : vector<24x1xf32> to vector<24x128xf32>
    %8 = arith.subf %2, %7 : vector<24x128xf32>
    %9 = arith.mulf %8, %8 : vector<24x128xf32>
    %cst_5 = arith.constant dense<0.000000e+00> : vector<24xf32>
    %10 = vector.multi_reduction <add>, %9, %cst_5 [1] : vector<24x128xf32> to vector<24xf32>
    %11 = vector.shape_cast %10 : vector<24xf32> to vector<24x1xf32>
    %cst_6 = arith.constant 1.280000e+02 : f32
    %12 = vector.broadcast %cst_6 : f32 to vector<24x1xf32>
    %13 = arith.divf %11, %12 : vector<24x1xf32>
    %14 = vector.broadcast %6 : vector<24x1xf32> to vector<24x128xf32>
    %15 = arith.subf %2, %14 : vector<24x128xf32>
    %cst_7 = arith.constant 9.99999974E-6 : f32
    %16 = vector.broadcast %cst_7 : f32 to vector<24x1xf32>
    %17 = arith.addf %13, %16 : vector<24x1xf32>
    %18 = math.rsqrt %17 : vector<24x1xf32>
    %19 = vector.broadcast %18 : vector<24x1xf32> to vector<24x128xf32>
    %20 = arith.mulf %15, %19 : vector<24x128xf32>
    %c0_8 = arith.constant 0 : index
    %c0_9 = arith.constant 0 : index
    %21 = vector.load %arg3[%c0_8, %c0_9] : memref<1x128xf32, #tpu.memory_space<vmem>>, vector<1x128xf32>
    %22 = vector.broadcast %21 : vector<1x128xf32> to vector<24x128xf32>
    %23 = arith.mulf %20, %22 : vector<24x128xf32>
    %c0_10 = arith.constant 0 : index
    %c0_11 = arith.constant 0 : index
    %24 = vector.load %arg4[%c0_10, %c0_11] : memref<1x128xf32, #tpu.memory_space<vmem>>, vector<1x128xf32>
    %25 = vector.broadcast %24 : vector<1x128xf32> to vector<24x128xf32>
    %26 = arith.addf %23, %25 : vector<24x128xf32>
    %c0_12 = arith.constant 0 : index
    %c0_13 = arith.constant 0 : index
    %27 = vector.load %arg5[%c0_12, %c0_13] : memref<24x128xf32, #tpu.memory_space<vmem>>, vector<24x128xf32>
    tpu.vector_store %arg5[%c0_12, %c0_13], %26 {strides = array<i32>} : memref<24x128xf32, #tpu.memory_space<vmem>>, vector<24x128xf32>,
    return
  }
  func.func @transform_0(%arg0: i32) -> (i32, i32) {
    %c0_i32 = arith.constant 0 : i32
    %c0_i32_0 = arith.constant 0 : i32
    return %arg0, %c0_i32 : i32, i32
  }
  func.func @transform_1(%arg0: i32) -> (i32, i32) {
    %c0_i32 = arith.constant 0 : i32
    %c0_i32_0 = arith.constant 0 : i32
    %c0_i32_1 = arith.constant 0 : i32
    return %c0_i32, %c0_i32_0 : i32, i32
  }
  func.func @transform_2(%arg0: i32) -> (i32, i32) {
    %c0_i32 = arith.constant 0 : i32
    %c0_i32_0 = arith.constant 0 : i32
    %c0_i32_1 = arith.constant 0 : i32
    return %c0_i32, %c0_i32_0 : i32, i32
  }
  func.func @transform_3(%arg0: i32) -> (i32, i32) {
    %c0_i32 = arith.constant 0 : i32
    %c0_i32_0 = arith.constant 0 : i32
    %c0_i32_1 = arith.constant 0 : i32
    return %c0_i32, %c0_i32_0 : i32, i32
  }
  func.func @transform_4(%arg0: i32) -> (i32, i32) {
    %c0_i32 = arith.constant 0 : i32
    %c0_i32_0 = arith.constant 0 : i32
    return %arg0, %c0_i32 : i32, i32
  }
}

</mosaic_0001>

<bundles_post_ra>
// kernel: tpu_custom_call.1
= control target key start
LH: loop header
LB: loop body
LE: loop exit
PB: predicated region body
PF: predicated region fallthrough
CT: control target
= control target key end

     0   :  { %9 = vsyncpa [#allocation3], 0  ;;  %s417_s0 = inlined_call_operand.hbm [shape: f32[24,64], index: 0, kind: input, shape index: {}]   ;;  %s418_s1 = inlined_call_operand.hbm [shape: f32[64,128], index: 1, kind: input, shape index: {}]   ;;  %s419_s2 = inlined_call_operand.vmem [shape: f32[1,128], index: 2, kind: input, shape index: {}]   ;;  %s420_s3 = inlined_call_operand.vmem [shape: f32[1,128], index: 3, kind: input, shape index: {}]   ;;  %s421_s4 = inlined_call_operand.hbm [shape: f32[24,128], index: 4, kind: output, shape index: {}]  }
   0x1   :  { %10 = vsyncpa [#allocation6], 0 }
   0x2   :  { %11 = vsyncpa [#allocation4], 0  ;;  %s358_s15 = smov [#allocation2]  }
   0x3   :  { %s17_s16 = sshll.u32 %s358_s15, 4  ;;  %s18_s16 = int_to_ptr.vmem [resolvable:$true] %s17_s16 }
   0x4   :  { %s300_s17 = scalar_lea.vmem %s18_s16, 384  ;;  %p305_p1 = scmp.lt.s32.totalorder %s18_s16, %s18_s16 }
   0x5   :  { %p301_p0 = scmp.ne.s32.totalorder %s18_s16, %s300_s17  ;;  %p306_p2 = scmp.lt.s32.totalorder %s300_s17, %s300_s17 }
   0x7   :  { %p307_p3 = por %p306_p2, %p305_p1 }
   0x9   :  { %p308_p4 = pnand %p307_p3, %p301_p0 }
   0xb   :  { %311 = shalt.err (!%p308_p4)
}
   0xc   :  { %s359_s18 = smov 128   ;;  %s360_s19 = smov 8  }
   0xd   :  { %23 = dma.hbm_to_vmem [thread:$0]  %s417_s0, 384, %s18_s16, [#allocation3], %s359_s18, %s359_s18, %s360_s19  }
   0xe   :  { %s361_s22 = smov [#allocation5]  }
   0xf   :  { %s29_s23 = sshll.u32 %s361_s22, 4  ;;  %s30_s23 = int_to_ptr.vmem [resolvable:$true] %s29_s23 }
  0x10   :  { %s320_s24 = scalar_lea.vmem %s30_s23, 1024  ;;  %p325_p6 = scmp.lt.s32.totalorder %s30_s23, %s30_s23 }
  0x11   :  { %p321_p5 = scmp.ne.s32.totalorder %s30_s23, %s320_s24  ;;  %p326_p7 = scmp.lt.s32.totalorder %s320_s24, %s320_s24 }
  0x13   :  { %p327_p8 = por %p326_p7, %p325_p6 }
  0x15   :  { %p328_p9 = pnand %p327_p8, %p321_p5 }
  0x17   :  { %331 = shalt.err (!%p328_p9)
}
  0x18   :  { %35 = dma.hbm_to_vmem [thread:$0]  %s418_s1, 1024, %s30_s23, [#allocation6], %s359_s18, %s359_s18, %s360_s19  }
  0x19   :  { %352 = dma.done.wait [#allocation3], 384  }
  0x1a   :  { %353 = vsyncadd [#allocation3], 4294966912 }
  0x1b   :  { %354 = dma.done.wait [#allocation6], 1024  }
  0x1c   :  { %355 = vsyncadd [#allocation6], 4294966272  ;;  %v362_v0 = vmov 0.0   ;;  %vm363_vm0 = vmmov 0   ;;  %v56_v1 = vld [vmem:[#allocation5 + $0x38] sm:$0xff]  ;;  %v55_v2 = vld [vmem:[#allocation5 + $0x30] sm:$0xff] }
  0x1d   :  { %238 = vmatprep.subr.mxu0 %v362_v0  ;;  %263 = vmatprep.subr.mxu1 %v362_v0  ;;  %v54_v3 = vld [vmem:[#allocation5 + $0x28] sm:$0xff]  ;;  %v53_v4 = vld [vmem:[#allocation5 + $0x20] sm:$0xff]  ;;  %v52_v5 = vld [vmem:[#allocation5 + $0x18] sm:$0xff]  ;;  %vm57_vm1 = vcmask 523264   ;;  %s364_s29 = smov [#allocation7]  }
  0x1e   :  { %254 = vmatprep.mubr.msk.f32.mxu0 %vm363_vm0, %v362_v0  ;;  %257 = vmatprep.mubr.msk.f32.mxu1 %vm363_vm0, %v362_v0  ;;  %v51_v6 = vld [vmem:[#allocation5 + $0x10] sm:$0xff]  ;;  %v50_v7 = vld [vmem:[#allocation5 + $0x8] sm:$0xff]  ;;  %v49_v8 = vld [vmem:[#allocation5] sm:$0xff]  ;;  %s209_s30 = sshll.u32 %s364_s29, 4  ;;  %s210_s30 = int_to_ptr.vmem [resolvable:$true] %s209_s30 }
  0x1f   :  { %239 = vmatpush3.msra.mxu0 %v56_v1  ;;  %271 = vmatpush3.msra.mxu1 %v56_v1  ;;  %v46_v9 = vld [vmem:[#allocation2] sm:$0xff]  ;;  %v47_v10 = vld [vmem:[#allocation2 + $0x8] sm:$0xff]  ;;  %v48_v11 = vld [vmem:[#allocation2 + $0x10] sm:$0xff]  ;;  %p337_p11 = scmp.lt.s32.totalorder %s210_s30, %s210_s30 }
  0x20   :  { %240 = vmatprep.subr.mxu0 %v362_v0  ;;  %264 = vmatprep.subr.mxu1 %v362_v0  ;;  %v225_v40 = vld [vmem:[%s419_s2] ss:$0 sm:$0xff]  ;;  %s332_s2 = scalar_lea.vmem %s210_s30, 384 }
  0x21   :  { %241 = vmatpush3.msra.mxu0 %v55_v2  ;;  %272 = vmatpush3.msra.mxu1 %v55_v2  ;;  %v226_v42 = vld [vmem:[%s420_s3] ss:$0 sm:$0xff]  ;;  %p333_p10 = scmp.ne.s32.totalorder %s210_s30, %s332_s2  ;;  %p338_p12 = scmp.lt.s32.totalorder %s332_s2, %s332_s2 }
  0x22   :  { %242 = vmatprep.subr.mxu0 %v362_v0  ;;  %265 = vmatprep.subr.mxu1 %v362_v0 }
  0x23   :  { %243 = vmatpush3.msra.mxu0 %v54_v3  ;;  %273 = vmatpush3.msra.mxu1 %v54_v3  ;;  %p339_p13 = por %p338_p12, %p337_p11 }
  0x24   :  { %244 = vmatprep.subr.mxu0 %v362_v0  ;;  %266 = vmatprep.subr.mxu1 %v362_v0 }
  0x25   :  { %245 = vmatpush3.msra.mxu0 %v53_v4  ;;  %274 = vmatpush3.msra.mxu1 %v53_v4  ;;  %p340_p0 = pnand %p339_p13, %p333_p10 }
  0x26   :  { %246 = vmatprep.subr.mxu0 %v362_v0  ;;  %267 = vmatprep.subr.mxu1 %v362_v0 }
  0x27   :  { %247 = vmatpush3.msra.mxu0 %v52_v5  ;;  %275 = vmatpush3.msra.mxu1 %v52_v5 }
  0x28   :  { %248 = vmatprep.subr.mxu0 %v362_v0  ;;  %268 = vmatprep.subr.mxu1 %v362_v0 }
  0x29   :  { %249 = vmatpush3.msra.mxu0 %v51_v6  ;;  %276 = vmatpush3.msra.mxu1 %v51_v6 }
  0x2a   :  { %250 = vmatprep.subr.mxu0 %v362_v0  ;;  %269 = vmatprep.subr.mxu1 %v362_v0 }
  0x2b   :  { %251 = vmatpush3.msra.mxu0 %v50_v7  ;;  %277 = vmatpush3.msra.mxu1 %v50_v7 }
  0x2c   :  { %252 = vmatprep.subr.mxu0 %v362_v0  ;;  %270 = vmatprep.subr.mxu1 %v362_v0 }
  0x2d   :  { %253 = vmatpush3.msra.mxu0 %v49_v8  ;;  %278 = vmatpush3.msra.mxu1 %v49_v8 }
  0x2e   :  { %255 = vmatmul.mubr.msk.f32.vlgmr.msra.gmra.mxu0 %vm57_vm1, %v46_v9  ;;  %258 = vmatmul.mubr.msk.f32.vlgmr.msra.gmra.mxu1 %vm57_vm1, %v47_v10 }
  0x2f   :  { %260 = vmatprep.mubr.msk.f32.mxu1 %vm363_vm0, %v362_v0 }
  0x32   :  { %261 = vmatmul.mubr.msk.f32.gmra.mxu1 %vm57_vm1, %v48_v11 }
  0xee   :  { %v133_v12 = vpop.f32.mrf.mxu0  ;;  %v138_v13 = vpop.f32.mrf.mxu1 }
  0xef   :  { %147 = vadd.xlane.f32.xlu0 %v133_v12 }
  0xf0   :  { %v256_v14 = vpop.f32.mrf.mxu0  ;;  %v259_v15 = vpop.f32.mrf.mxu1 }
  0xf2   :  { %v143_v16 = vpop.f32.mrf.mxu1 }
  0xf3   :  { %151 = vadd.xlane.f32.xlu1 %v143_v16  ;;  %149 = vadd.xlane.f32.xlu0 %v138_v13 }
  0xf4   :  { %v262_v17 = vpop.f32.mrf.mxu1 }
 0x178   :  { %v148_v18 = vpop.xlane.xlu0 %147 }
 0x179   :  { %v154_v19 = vmul.f32 0.0078125, %v148_v18 }
 0x17b   :  { %v157_v20 = vsub.f32 %v133_v12, %v154_v19 }
 0x17c   :  { %v152_v21 = vpop.xlane.xlu1 %151  ;;  %v150_v22 = vpop.xlane.xlu0 %149 }
 0x17d   :  { %v156_v23 = vmul.f32 0.0078125, %v152_v21  ;;  %v155_v24 = vmul.f32 0.0078125, %v150_v22  ;;  %v160_v25 = vmul.f32 %v157_v20, %v157_v20 }
 0x17f   :  { %v159_v26 = vsub.f32 %v143_v16, %v156_v23  ;;  %v158_v27 = vsub.f32 %v138_v13, %v155_v24  ;;  %163 = vadd.xlane.f32.xlu1 %v160_v25 }
 0x181   :  { %v162_v28 = vmul.f32 %v159_v26, %v159_v26  ;;  %v161_v29 = vmul.f32 %v158_v27, %v158_v27 }
 0x183   :  { %167 = vadd.xlane.f32.xlu1 %v162_v28  ;;  %165 = vadd.xlane.f32.xlu0 %v161_v29 }
 0x208   :  { %v164_v30 = vpop.xlane.xlu1 %163 }
 0x209   :  { %v169_v31 = vmul.f32 0.0078125, %v164_v30 }
 0x20b   :  { %v172_v32 = vadd.f32 1e-05, %v169_v31 }
 0x20c   :  { %v168_v33 = vpop.xlane.xlu1 %167  ;;  %v166_v34 = vpop.xlane.xlu0 %165 }
 0x20d   :  { %286 = vrsqrt.f32 %v172_v32  ;;  %v171_v35 = vmul.f32 0.0078125, %v168_v33  ;;  %v170_v36 = vmul.f32 0.0078125, %v166_v34 }
 0x20f   :  { %v174_v37 = vadd.f32 1e-05, %v171_v35  ;;  %v173_v38 = vadd.f32 1e-05, %v170_v36 }
 0x211   :  { %288 = vrsqrt.f32 %v174_v37 }
 0x212   :  { %290 = vrsqrt.f32 %v173_v38 }
 0x21a   :  { %v287_v39 = vpop.eup %286 }
 0x21b   :  { %v178_v41 = vmul.f32 %v287_v39, %v157_v20 }
 0x21d   :  { %v188_v43 = vmul.f32 %v225_v40, %v178_v41 }
 0x21e   :  { %v289_v44 = vpop.eup %288 }
 0x21f   :  { %v291_v45 = vpop.eup %290  ;;  %v180_v46 = vmul.f32 %v289_v44, %v159_v26  ;;  %v198_v47 = vadd.f32 %v226_v42, %v188_v43 }
 0x220   :  { %v179_v48 = vmul.f32 %v291_v45, %v158_v27 }
 0x221   :  { %v190_v49 = vmul.f32 %v225_v40, %v180_v46  ;;  %201 = vst [vmem:[#allocation7] sm:$0xff] %v198_v47 }
 0x222   :  { %v189_v50 = vmul.f32 %v225_v40, %v179_v48 }
 0x223   :  { %v200_v51 = vadd.f32 %v226_v42, %v190_v49 }
 0x224   :  { %v199_v52 = vadd.f32 %v226_v42, %v189_v50 }
 0x225   :  { %203 = vst [vmem:[#allocation7 + $0x10] sm:$0xff] %v200_v51 }
 0x226   :  { %202 = vst [vmem:[#allocation7 + $0x8] sm:$0xff] %v199_v52 }
 0x227   :  { %343 = shalt.err (!%p340_p0)
}
 0x228   :  { %215 = dma.vmem_to_hbm [thread:$0]  %s210_s30, 384, %s421_s4, [#allocation4], %s359_s18, %s359_s18, %s360_s19  }
 0x229   :  { %356 = dma.done.wait [#allocation4], 384  }
 0x22a   :  { %357 = vsyncadd [#allocation4], 4294966912 }
 0x22b   :  { %219 = vsyncpa [#allocation3], 1 }
 0x22c   :  { %220 = vsyncpa [#allocation6], 1 }
 0x22d   :  { %221 = vsyncpa [#allocation4], 1 }

</bundles_post_ra>
